<compile_context>
chip_gen: v7x
topology: tpu7x:2x2x1
jax: 0.10.0
libtpu: 0.0.40
codegen_flags: <defaults>
</compile_context>

<pallas_src>
import jax
import jax.numpy as jnp
import numpy as np
from jax import lax
from jax.experimental import pallas as pl
from jax.experimental.pallas import tpu as pltpu

EPS = 1e-5  # PyTorch BatchNorm default eps


def _make_kernel(B, L1p, SP, Hp, K23, H3):
    """Fused conv1+BN1 + MaxPool2d(3) + composed(conv2∘BN2∘conv3∘BN3) for one batch block."""
    M1 = B * L1p          # conv1 matmul M  (flat rows = batch * padded conv1 length)
    Mp = B * SP           # pooled rows     (SP = L1p // 3 pooled positions per sample)

    def kernel(p1_ref, w1_ref, t1_ref, w23_ref, t23_ref, o_ref, cm_scr):
        # ---- Conv1d #1 + BN1 (folded): ONE batched im2col matmul, M = B*L1p.
        y1 = jnp.dot(p1_ref[...], w1_ref[...],
                     preferred_element_type=jnp.float32) + t1_ref[...]         # (M1, 3*Hp) f32

        # ---- MaxPool2d(3), channel dim: the three stride-3 output-channel groups were
        # packed side by side in the weight columns -> max of three 10-lane slices.
        cm = jnp.maximum(jnp.maximum(y1[:, 0:Hp], y1[:, Hp:2 * Hp]),
                         y1[:, 2 * Hp:3 * Hp])                                  # (M1, Hp)

        # ---- MaxPool2d(3), length dim: one batched VMEM store + 3 sublane-strided reads.
        # L1p % 3 == 0 keeps per-sample row groups aligned across the flat layout.
        cm_scr[...] = cm
        pooled = jnp.maximum(
            jnp.maximum(cm_scr[pl.ds(0, Mp, stride=3), :],
                        cm_scr[pl.ds(1, Mp, stride=3), :]),
            cm_scr[pl.ds(2, Mp, stride=3), :])                                  # (Mp, Hp)

        # ---- Composed conv2∘BN2∘conv3∘BN3 (Identity activation + eval Dropout make the
        # two convs one affine conv of kernel K23): shifted flat-window im2col + ONE matmul.
        # Valid rows (per-sample position w < L3) only read pooled rows of their own
        # sample since L3 + K23 - 1 == Wp <= SP; trailing zero rows keep slices in range,
        # garbage rows are discarded by the wrapper.
        pooled = jnp.concatenate(
            [pooled, jnp.zeros((K23 - 1, Hp), jnp.float32)], axis=0)            # (Mp+K23-1, Hp)
        patches = jnp.concatenate(
            [pooled[k:k + Mp, :] for k in range(K23)], axis=1)                  # (Mp, Hp*K23)
        y3 = jnp.dot(patches.astype(jnp.bfloat16), w23_ref[...],
                     preferred_element_type=jnp.float32) + t23_ref[...]         # (Mp, H3)

        o_ref[...] = y3.astype(o_ref.dtype)

    return kernel


def three_layer_conv1d_unit(x, params, *, batch_block=128):
    (w1, g1, b1, m1, v1, w2, g2, b2, m2, v2, w3, g3, b3, m3, v3) = params
    f32, bf16 = jnp.float32, jnp.bfloat16

    N, C_in, L = x.shape
    H1, _, K1 = w1.shape
    L1 = (L - K1) // 2 + 1                 # conv1 (stride 2) output length
    Hp = (H1 - 3) // 3 + 1                 # MaxPool2d(3) over the channel dim
    Wp = (L1 - 3) // 3 + 1                 # MaxPool2d(3) over the length dim
    H2, Cp, K2 = w2.shape
    assert Cp == Hp, "LazyConv1d #2 infers in_channels = pooled channel dim"
    L2 = Wp - K2 + 1
    H3, C3, K3 = w3.shape
    assert C3 == H2
    K23 = K2 + K3 - 1                      # composed conv2∘conv3 kernel size (11)
    L3 = L2 - K3 + 1                       # == Wp - K23 + 1
    assert L3 >= 1

    # ---- fold BatchNorm (inference) into conv-weight scales + per-channel shifts.
    def fold(g, b, m, v):
        s = (g / jnp.sqrt(v + EPS)).astype(f32)
        return s, (b - m * s).astype(f32)

    s1, t1 = fold(g1, b1, m1, v1)
    s2, t2 = fold(g2, b2, m2, v2)
    s3, t3 = fold(g3, b3, m3, v3)

    # conv1 weight in im2col layout (rows = k*C_in + c), BN1 scale folded; the channel-dim
    # max pool's three stride-3 output-channel groups are packed side by side in columns.
    w1s = w1.astype(f32) * s1[:, None, None]
    w1_kc = jnp.transpose(w1s, (2, 1, 0)).reshape(K1 * C_in, H1)
    w1m = jnp.concatenate([w1_kc[:, r:r + 3 * Hp:3] for r in range(3)], axis=1)  # (K1*C_in, 3*Hp)
    t1m = jnp.concatenate([t1[r:r + 3 * Hp:3] for r in range(3)])[None, :]       # (1, 3*Hp)

    # Compose conv2∘BN2∘conv3∘BN3 (activation = Identity, Dropout eval no-op) into ONE
    # affine conv: w23[h3, c, k2+k3] = sum_h2 w3s[h3,h2,k3] * w2s[h2,c,k2].
    w2s = w2.astype(f32) * s2[:, None, None]
    w3s = w3.astype(f32) * s3[:, None, None]
    w23 = jnp.zeros((H3, Cp, K23), f32)
    for k3 in range(K3):
        w23 = w23.at[:, :, k3:k3 + K2].add(jnp.einsum('ab,bck->ack', w3s[:, :, k3], w2s))
    t23 = (t3 + jnp.einsum('abk,b->a', w3s, t2))[None, :]                         # (1, H3)
    w23f = jnp.transpose(w23, (2, 1, 0)).reshape(K23 * Hp, H3)                    # rows = k*Hp + c

    # ---- conv1 im2col hoisted to the wrapper (stride-2 folded into the gather).
    # Per-sample length padded to a multiple of 48 (lcm of 3 for the pool split and 16 for
    # the bf16 sublane tile), so the kernel never needs in-kernel reshapes.
    L1p = -(-L1 // 48) * 48
    SP = L1p // 3                          # pooled rows per sample held in the flat layout
    pos = jnp.arange(L1) * 2
    taps = jnp.arange(K1)
    gat = x.astype(f32)[:, :, pos[:, None] + taps[None, :]]            # (N, C_in, L1, K1)
    p1 = jnp.transpose(gat, (0, 2, 3, 1)).reshape(N, L1, K1 * C_in)    # cols = k*C_in + c
    p1 = jnp.pad(p1, ((0, 0), (0, L1p - L1), (0, 0)))                  # zero rows never kept

    # ---- batch blocking: B samples per grid step; keep >= 2 grid steps so the "parallel"
    # batch axis can shard across v7x's two TensorCores (neutral on v5e/v6e).
    n_blocks = max(1, pl.cdiv(N, batch_block))
    if N > 1:
        n_blocks = max(n_blocks, 2)
    B = pl.cdiv(N, n_blocks)
    N_pad = n_blocks * B
    if N_pad != N:
        p1 = jnp.pad(p1, ((0, N_pad - N), (0, 0), (0, 0)))
    p1 = p1.reshape(N_pad * L1p, K1 * C_in).astype(bf16)               # flat rows: n*L1p + t

    KC1 = K1 * C_in
    kernel = _make_kernel(B, L1p, SP, Hp, K23, H3)

    out_flat = pl.pallas_call(
        kernel,
        out_shape=jax.ShapeDtypeStruct((N_pad * SP, H3), f32),
        grid=(n_blocks,),
        in_specs=[
            pl.BlockSpec((B * L1p, KC1), lambda n: (n, 0)),    # im2col patches (bf16)
            pl.BlockSpec((KC1, 3 * Hp), lambda n: (0, 0)),     # conv1 grouped weight (bf16)
            pl.BlockSpec((1, 3 * Hp), lambda n: (0, 0)),       # conv1 grouped shift  (f32)
            pl.BlockSpec((K23 * Hp, H3), lambda n: (0, 0)),    # composed conv weight (bf16)
            pl.BlockSpec((1, H3), lambda n: (0, 0)),           # composed shift (f32)
        ],
        out_specs=pl.BlockSpec((B * SP, H3), lambda n: (n, 0)),
        scratch_shapes=[pltpu.VMEM((B * L1p, Hp), jnp.float32)],
        compiler_params=pltpu.CompilerParams(
            dimension_semantics=("parallel",),
            vmem_limit_bytes=32 * 1024 * 1024),
    )(p1, w1m.astype(bf16), t1m, w23f.astype(bf16), t23)

    # Flat output rows are n*SP + w; only w < L3 are valid.  PyTorch layout is (N, C, L).
    out = out_flat.reshape(N_pad, SP, H3)[:N, :L3, :]
    return jnp.transpose(out, (0, 2, 1))


def reference(x, params):
    """Pure-JAX reference mirroring the PyTorch forward (eval mode)."""
    (w1, g1, b1, m1, v1, w2, g2, b2, m2, v2, w3, g3, b3, m3, v3) = params

    def conv1d(y, w, s):
        return lax.conv_general_dilated(y, w, (s,), 'VALID',
                                        dimension_numbers=('NCH', 'OIH', 'NCH'))

    def bn(y, g, b, m, v):
        return ((y - m[None, :, None]) / jnp.sqrt(v[None, :, None] + EPS)
                * g[None, :, None] + b[None, :, None])

    y = bn(conv1d(x, w1, 2), g1, b1, m1, v1)
    # nn.MaxPool2d(3) on a 3-D (N, C, L) tensor pools over the last two dims.
    y = lax.reduce_window(y, -jnp.inf, lax.max, (1, 3, 3), (1, 3, 3), 'VALID')
    y = bn(conv1d(y, w2, 1), g2, b2, m2, v2)
    y = bn(conv1d(y, w3, 1), g3, b3, m3, v3)
    return y


if __name__ == "__main__":
    key = jax.random.PRNGKey(0)
    # Small shapes consistent with the module: hidden_size_1d = 32, kernel sizes 13/7/5,
    # so the sequence must be >= 77; use L = 96.
    N, C_in, L = 2, 4, 96
    H1 = 32            # config.hidden_size_1d
    H2 = H3 = 64       # config.hidden_size_1d * 2
    L1 = (L - 13) // 2 + 1          # 42
    Hp = (H1 - 3) // 3 + 1          # 10 -> inferred in_channels of fc2 (MaxPool2d quirk)

    ks = jax.random.split(key, 7)
    x = jax.random.normal(ks[0], (N, C_in, L), jnp.float32)
    w1 = 0.1 * jax.random.normal(ks[1], (H1, C_in, 13), jnp.float32)
    w2 = 0.1 * jax.random.normal(ks[2], (H2, Hp, 7), jnp.float32)
    w3 = 0.1 * jax.random.normal(ks[3], (H3, H2, 5), jnp.float32)

    def bn_params(k, c):
        k1, k2, k3, k4 = jax.random.split(k, 4)
        gamma = 1.0 + 0.1 * jax.random.normal(k1, (c,), jnp.float32)
        beta = 0.1 * jax.random.normal(k2, (c,), jnp.float32)
        mean = 0.1 * jax.random.normal(k3, (c,), jnp.float32)
        var = jax.random.uniform(k4, (c,), jnp.float32, minval=0.5, maxval=1.5)
        return gamma, beta, mean, var

    g1, b1, m1, v1 = bn_params(ks[4], H1)
    g2, b2, m2, v2 = bn_params(ks[5], H2)
    g3, b3, m3, v3 = bn_params(ks[6], H3)
    params = (w1, g1, b1, m1, v1, w2, g2, b2, m2, v2, w3, g3, b3, m3, v3)

    out = jax.block_until_ready(three_layer_conv1d_unit(x, params))
    ref = jax.block_until_ready(reference(x, params))

    Wp = (L1 - 3) // 3 + 1
    L3 = ((Wp - 7 + 1) - 5 + 1)
    assert out.shape == (N, H3, L3), (out.shape, (N, H3, L3))
    # bf16 MXU operands / f32 accumulation: comfortably inside the 2e-2 tolerance.
    np.testing.assert_allclose(np.asarray(out), np.asarray(ref), rtol=2e-2, atol=2e-2)
    print("KERNEL_OK")
</pallas_src>

<mosaic_0001>
module attributes {stable_mosaic.version = 11 : i64} {
  func.func @kernel(%arg0: i32, %arg1: memref<48x52xbf16, #tpu.memory_space<vmem>>, %arg2: memref<52x30xbf16, #tpu.memory_space<vmem>>, %arg3: memref<1x30xf32, #tpu.memory_space<vmem>>, %arg4: memref<110x64xbf16, #tpu.memory_space<vmem>>, %arg5: memref<1x64xf32, #tpu.memory_space<vmem>>, %arg6: memref<16x64xf32, #tpu.memory_space<vmem>>, %arg7: memref<48x10xf32, #tpu.memory_space<vmem>>) attributes {dimension_semantics = [#tpu.dimension_semantics<parallel>], iteration_bounds = array<i64: 2>, scalar_prefetch = 0 : i64, scratch_operands = 1 : i64, tpu.core_type = #tpu.core_type<tc>, window_params = [{transform_indices = @transform_0, window_bounds = array<i64: 48, 52>}, {pipeline_mode = #tpu.pipeline_mode<synchronous>, transform_indices = @transform_1, window_bounds = array<i64: 52, 30>}, {pipeline_mode = #tpu.pipeline_mode<synchronous>, transform_indices = @transform_2, window_bounds = array<i64: 1, 30>}, {pipeline_mode = #tpu.pipeline_mode<synchronous>, transform_indices = @transform_3, window_bounds = array<i64: 110, 64>}, {pipeline_mode = #tpu.pipeline_mode<synchronous>, transform_indices = @transform_4, window_bounds = array<i64: 1, 64>}, {transform_indices = @transform_5, window_bounds = array<i64: 16, 64>}]} {
    %c0 = arith.constant 0 : index
    %c0_0 = arith.constant 0 : index
    %0 = vector.load %arg1[%c0, %c0_0] : memref<48x52xbf16, #tpu.memory_space<vmem>>, vector<48x52xbf16>
    %c0_1 = arith.constant 0 : index
    %c0_2 = arith.constant 0 : index
    %1 = vector.load %arg2[%c0_1, %c0_2] : memref<52x30xbf16, #tpu.memory_space<vmem>>, vector<52x30xbf16>
    %cst = arith.constant dense<0.000000e+00> : vector<48x30xf32>
    %2 = tpu.matmul %0, %1, %cst {dimension_numbers = #tpu.dot_dimension_numbers<[1], [0], [0], [1], [0, 0, 1, 1], [], []>} : vector<48x52xbf16>, vector<52x30xbf16>, vector<48x30xf32> -> vector<48x30xf32>
    %c0_3 = arith.constant 0 : index
    %c0_4 = arith.constant 0 : index
    %3 = vector.load %arg3[%c0_3, %c0_4] : memref<1x30xf32, #tpu.memory_space<vmem>>, vector<1x30xf32>
    %4 = vector.broadcast %3 : vector<1x30xf32> to vector<48x30xf32>
    %5 = arith.addf %2, %4 : vector<48x30xf32>
    %6 = vector.extract_strided_slice %5 {offsets = [0, 0], sizes = [48, 10], strides = [1, 1]} : vector<48x30xf32> to vector<48x10xf32>
    %7 = vector.extract_strided_slice %5 {offsets = [0, 10], sizes = [48, 10], strides = [1, 1]} : vector<48x30xf32> to vector<48x10xf32>
    %8 = arith.maximumf %6, %7 : vector<48x10xf32>
    %9 = vector.extract_strided_slice %5 {offsets = [0, 20], sizes = [48, 10], strides = [1, 1]} : vector<48x30xf32> to vector<48x10xf32>
    %10 = arith.maximumf %8, %9 : vector<48x10xf32>
    %c0_5 = arith.constant 0 : index
    %c0_6 = arith.constant 0 : index
    %11 = vector.load %arg7[%c0_5, %c0_6] : memref<48x10xf32, #tpu.memory_space<vmem>>, vector<48x10xf32>
    tpu.vector_store %arg7[%c0_5, %c0_6], %10 {strides = array<i32>} : memref<48x10xf32, #tpu.memory_space<vmem>>, vector<48x10xf32>,
    %c0_7 = arith.constant 0 : index
    %c0_8 = arith.constant 0 : index
    %12 = tpu.strided_load %arg7[%c0_7, %c0_8] {strides = array<i32: 3, 1>} : memref<48x10xf32, #tpu.memory_space<vmem>>, vector<16x10xf32>
    %c1 = arith.constant 1 : index
    %c0_9 = arith.constant 0 : index
    %13 = tpu.strided_load %arg7[%c1, %c0_9] {strides = array<i32: 3, 1>} : memref<48x10xf32, #tpu.memory_space<vmem>>, vector<16x10xf32>
    %14 = arith.maximumf %12, %13 : vector<16x10xf32>
    %c2 = arith.constant 2 : index
    %c0_10 = arith.constant 0 : index
    %15 = tpu.strided_load %arg7[%c2, %c0_10] {strides = array<i32: 3, 1>} : memref<48x10xf32, #tpu.memory_space<vmem>>, vector<16x10xf32>
    %16 = arith.maximumf %14, %15 : vector<16x10xf32>
    %cst_11 = arith.constant 0.000000e+00 : f32
    %17 = vector.broadcast %cst_11 : f32 to vector<10x10xf32>
    %18 = tpu.concatenate %16, %17 in 0 : vector<16x10xf32>, vector<10x10xf32> -> vector<26x10xf32>
    %19 = vector.extract_strided_slice %18 {offsets = [0, 0], sizes = [16, 10], strides = [1, 1]} : vector<26x10xf32> to vector<16x10xf32>
    %20 = vector.extract_strided_slice %18 {offsets = [1, 0], sizes = [16, 10], strides = [1, 1]} : vector<26x10xf32> to vector<16x10xf32>
    %21 = vector.extract_strided_slice %18 {offsets = [2, 0], sizes = [16, 10], strides = [1, 1]} : vector<26x10xf32> to vector<16x10xf32>
    %22 = vector.extract_strided_slice %18 {offsets = [3, 0], sizes = [16, 10], strides = [1, 1]} : vector<26x10xf32> to vector<16x10xf32>
    %23 = vector.extract_strided_slice %18 {offsets = [4, 0], sizes = [16, 10], strides = [1, 1]} : vector<26x10xf32> to vector<16x10xf32>
    %24 = vector.extract_strided_slice %18 {offsets = [5, 0], sizes = [16, 10], strides = [1, 1]} : vector<26x10xf32> to vector<16x10xf32>
    %25 = vector.extract_strided_slice %18 {offsets = [6, 0], sizes = [16, 10], strides = [1, 1]} : vector<26x10xf32> to vector<16x10xf32>
    %26 = vector.extract_strided_slice %18 {offsets = [7, 0], sizes = [16, 10], strides = [1, 1]} : vector<26x10xf32> to vector<16x10xf32>
    %27 = vector.extract_strided_slice %18 {offsets = [8, 0], sizes = [16, 10], strides = [1, 1]} : vector<26x10xf32> to vector<16x10xf32>
    %28 = vector.extract_strided_slice %18 {offsets = [9, 0], sizes = [16, 10], strides = [1, 1]} : vector<26x10xf32> to vector<16x10xf32>
    %29 = vector.extract_strided_slice %18 {offsets = [10, 0], sizes = [16, 10], strides = [1, 1]} : vector<26x10xf32> to vector<16x10xf32>
    %30 = tpu.concatenate %19, %20, %21, %22, %23, %24, %25, %26, %27, %28, %29 in 1 : vector<16x10xf32>, vector<16x10xf32>, vector<16x10xf32>, vector<16x10xf32>, vector<16x10xf32>, vector<16x10xf32>, vector<16x10xf32>, vector<16x10xf32>, vector<16x10xf32>, vector<16x10xf32>, vector<16x10xf32> -> vector<16x110xf32>
    %31 = arith.truncf %30 : vector<16x110xf32> to vector<16x110xbf16>
    %c0_12 = arith.constant 0 : index
    %c0_13 = arith.constant 0 : index
    %32 = vector.load %arg4[%c0_12, %c0_13] : memref<110x64xbf16, #tpu.memory_space<vmem>>, vector<110x64xbf16>
    %cst_14 = arith.constant dense<0.000000e+00> : vector<16x64xf32>
    %33 = tpu.matmul %31, %32, %cst_14 {dimension_numbers = #tpu.dot_dimension_numbers<[1], [0], [0], [1], [0, 0, 1, 1], [], []>} : vector<16x110xbf16>, vector<110x64xbf16>, vector<16x64xf32> -> vector<16x64xf32>
    %c0_15 = arith.constant 0 : index
    %c0_16 = arith.constant 0 : index
    %34 = vector.load %arg5[%c0_15, %c0_16] : memref<1x64xf32, #tpu.memory_space<vmem>>, vector<1x64xf32>
    %35 = vector.broadcast %34 : vector<1x64xf32> to vector<16x64xf32>
    %36 = arith.addf %33, %35 : vector<16x64xf32>
    %c0_17 = arith.constant 0 : index
    %c0_18 = arith.constant 0 : index
    %37 = vector.load %arg6[%c0_17, %c0_18] : memref<16x64xf32, #tpu.memory_space<vmem>>, vector<16x64xf32>
    tpu.vector_store %arg6[%c0_17, %c0_18], %36 {strides = array<i32>} : memref<16x64xf32, #tpu.memory_space<vmem>>, vector<16x64xf32>,
    return
  }
  func.func @transform_0(%arg0: i32) -> (i32, i32) {
    %c0_i32 = arith.constant 0 : i32
    %c0_i32_0 = arith.constant 0 : i32
    return %arg0, %c0_i32 : i32, i32
  }
  func.func @transform_1(%arg0: i32) -> (i32, i32) {
    %c0_i32 = arith.constant 0 : i32
    %c0_i32_0 = arith.constant 0 : i32
    %c0_i32_1 = arith.constant 0 : i32
    return %c0_i32, %c0_i32_0 : i32, i32
  }
  func.func @transform_2(%arg0: i32) -> (i32, i32) {
    %c0_i32 = arith.constant 0 : i32
    %c0_i32_0 = arith.constant 0 : i32
    %c0_i32_1 = arith.constant 0 : i32
    return %c0_i32, %c0_i32_0 : i32, i32
  }
  func.func @transform_3(%arg0: i32) -> (i32, i32) {
    %c0_i32 = arith.constant 0 : i32
    %c0_i32_0 = arith.constant 0 : i32
    %c0_i32_1 = arith.constant 0 : i32
    return %c0_i32, %c0_i32_0 : i32, i32
  }
  func.func @transform_4(%arg0: i32) -> (i32, i32) {
    %c0_i32 = arith.constant 0 : i32
    %c0_i32_0 = arith.constant 0 : i32
    %c0_i32_1 = arith.constant 0 : i32
    return %c0_i32, %c0_i32_0 : i32, i32
  }
  func.func @transform_5(%arg0: i32) -> (i32, i32) {
    %c0_i32 = arith.constant 0 : i32
    %c0_i32_0 = arith.constant 0 : i32
    return %arg0, %c0_i32 : i32, i32
  }
}

</mosaic_0001>

<bundles_post_ra>
// kernel: tpu_custom_call.1
= control target key start
LH: loop header
LB: loop body
LE: loop exit
PB: predicated region body
PF: predicated region fallthrough
CT: control target
= control target key end

     0   :  { %10 = vsyncpa [#allocation4], 0  ;;  %s1289_s0 = inlined_call_operand.vmem [shape: bf16[96,52], index: 0, kind: input, shape index: {}]   ;;  %s1290_s1 = inlined_call_operand.vmem [shape: bf16[52,30], index: 1, kind: input, shape index: {}]   ;;  %s1291_s2 = inlined_call_operand.vmem [shape: f32[1,30], index: 2, kind: input, shape index: {}]   ;;  %s1292_s3 = inlined_call_operand.vmem [shape: bf16[110,64], index: 3, kind: input, shape index: {}]   ;;  %s1293_s4 = inlined_call_operand.vmem [shape: f32[1,64], index: 4, kind: input, shape index: {}]   ;;  %s1294_s5 = inlined_call_operand.hbm [shape: f32[32,64], index: 5, kind: output, shape index: {}]  }
   0x1   :  { %12 = vsyncpa [#allocation4 + $0x1], 0  ;;  %s1070_s18 = smov 0   ;;  %s1072_s19 = smov 0  }
   0x2   :  { %s1074_s20 = smov 0   ;;  %s1076_s21 = smov 0  }
   0x3 LB: > { %s1091_s22 = sadd.s32 4294967295, %s1021_s21   ;;  %s755_s23 = sadd.s32 4294967294, %s1021_s21   ;;  %s1021_s21 = sphi %s1076_s21, %s1300_s21   ;;  %s1017_s20 = sphi %s1074_s20, %s1299_s20   ;;  %s1013_s19 = sphi %s1072_s19, %s1298_s19   ;;  %s1009_s18 = sphi %s1070_s18, %s1297_s18  }
   0x4   : > { %s1095_s24 = sadd.s32 1, %s1021_s21   ;;  %s135_s25 = sadd.s32 1, %s1017_s20 }
   0x5   : > { %s132_s26 = ssub.s32 %s1021_s21, %s1095_s24  ;;  %p145_p0 = scmp.ne.s32.totalorder %s1017_s20, %s1013_s19 }
   0x6   : > { %p133_p1 = scmp.eq.s32.totalorder %s132_s26, 0  ;;  %p146_p2 = scmp.eq.s32.totalorder %s1091_s22, 1 }
   0x7   : > { %p151_p3 = scmp.ne.s32.totalorder %s1013_s19, %s1009_s18  ;;  %p152_p4 = scmp.eq.s32.totalorder %s755_s23, 1 }
   0x8   : > { %s1106_s27 = scalar_select %p133_p1, %s1017_s20, %s135_s25  }
   0x9   : > { %p1108_p5 = por %p146_p2, %p145_p0  ;;  %p1112_p6 = por %p152_p4, %p151_p3 }
   0xa   : > { %p758_p7 = scmp.ge.s32.totalorder %s1021_s21, 1  ;;  %p191_p8 = scmp.lt.s32.totalorder %s1021_s21, 3 }
   0xc   : > { %p192_p9 = pnand %p758_p7, %p191_p8 }
   0xd   : > { %v945_v0 = vld [vmem:[%s1290_s1] sm:$0xff] (!%p192_p9)   ;;  %v1023_v1 = vmov (!%p192_p9), 0.0   ;;  %v946_v2 = vld [vmem:[%s1290_s1 + $0x8] sm:$0xff] (!%p192_p9)   ;;  %vm1024_vm0 = vmmov (!%p192_p9), 0   ;;  %s219_s9 = smul.u32 (!%p192_p9), 6, %s1091_s22  ;;  %v947_v3 = vld [vmem:[%s1290_s1 + $0x10] sm:$0xff] (!%p192_p9)  }
   0xe   : > { %195 = sbr.rel (%p192_p9) target bundleno = 770 (0x302), region = 40  ;;  %802 = vmatprep.subr.bf16.mxu0 (!%p192_p9), %v1023_v1  ;;  %822 = vmatprep.subr.bf16.mxu1 (!%p192_p9), %v1023_v1  ;;  %v948_v4 = vld [vmem:[%s1290_s1 + $0x18] ss:$0 sps:$4 sm:$0x33] (!%p192_p9)   ;;  %vm293_vm1 = vcmask (!%p192_p9), 1041408   ;;  %vm283_vm2 = vcmask (!%p192_p9), 424960  }
   0xf   : > { %803 = vmatpush3.bf16.msra.mxu0 (!%p192_p9), %v945_v0  ;;  %810 = vmatprep.mubr.msk.bf16.mxu0 (!%p192_p9), %vm1024_vm0, %v1023_v1  ;;  %p220_p10 = scmp.lt.s32.totalorder (!%p192_p9), %s219_s9, 11  ;;  %v295_v5 = vsel (!%p192_p9), %vm293_vm1, %v948_v4, 0  ;;  %v761_v9 = vld [vmem:[%s1291_s2] ss:$0 sm:$0xff] (!%p192_p9)  ;;  %s1025_s26 = smov (!%p192_p9), 118   ;;  %vm408_vm3 = vcmask (!%p192_p9), 80896  }
  0x10   : > { %804 = vmatprep.subr.bf16.mxu0 (!%p192_p9), %v1023_v1  ;;  %836 = vmatprep.mubr.msk.bf16.mxu1 (!%p192_p9), %vm1024_vm0, %v1023_v1  ;;  %s1026_s30 = smov (!%p192_p9), 108   ;;  %v952_v28 = vld [vmem:[%s1292_s3] sm:$0xff] (!%p192_p9)   ;;  %v953_v55 = vld [vmem:[%s1292_s3 + $0x8] sm:$0xff] (!%p192_p9)   ;;  %v954_v62 = vld [vmem:[%s1292_s3 + $0x10] sm:$0xff] (!%p192_p9)   ;;  %v1171_v0 = vrot.slane (!%p192_p9), %v1023_v1, 1  ;;  %vm433_vm4 = vcmask (!%p192_p9), 1046528  }
  0x11   : > { %823 = vmatpush3.bf16.msra.mxu1 (!%p192_p9), %v952_v28  ;;  %vm445_vm5 = vcmask (!%p192_p9), 1045504   ;;  %vm457_vm6 = vcmask (!%p192_p9), 1044480   ;;  %vm469_vm7 = vcmask (!%p192_p9), 1043456   ;;  %vm481_vm8 = vcmask (!%p192_p9), 1042432   ;;  %s1029_s23 = smov (!%p192_p9), 20   ;;  %s1031_s6 = smov (!%p192_p9), 40  }
  0x12   : > { %824 = vmatprep.subr.bf16.mxu1 (!%p192_p9), %v1023_v1  ;;  %vm504_vm9 = vcmask (!%p192_p9), 1040384   ;;  %s1033_s10 = smov (!%p192_p9), 60   ;;  %s1034_s11 = smov (!%p192_p9), 70   ;;  %vm538_vm10 = vcmask (!%p192_p9), 162816   ;;  %vm541_vm11 = vcmask (!%p192_p9), 244736   ;;  %vm544_vm12 = vcmask (!%p192_p9), 326656  }
  0x13   : > { %805 = vmatpush3.bf16.msra.mxu0 (!%p192_p9), %v946_v2  ;;  %s1035_s12 = smov (!%p192_p9), 100   ;;  %s1036_s13 = smov (!%p192_p9), 90   ;;  %vm547_vm13 = vcmask (!%p192_p9), 408576   ;;  %vm550_vm14 = vcmask (!%p192_p9), 490496   ;;  %vm553_vm15 = vcmask (!%p192_p9), 572416  }
  0x14   : > { %806 = vmatprep.subr.bf16.mxu0 (!%p192_p9), %v1023_v1 }
  0x15   : > { %s1302_s9 = smov (!%p220_p10, %s219_s9), 11  ;;  %825 = vmatpush3.bf16.msra.mxu1 %v953_v55 }
  0x16   : > { %s760_s14 = sshll.u32 %s1302_s9, 2  ;;  %826 = vmatprep.subr.bf16.mxu1 %v1023_v1  ;;  %s1032_s9 = smov 50  }
  0x17   : > { %807 = vmatpush3.bf16.msra.mxu0 %v947_v3  ;;  %s223_s17 = scalar_lea.vmem %s1289_s0, %s760_s14  ;;  %v1176_v3 = vrot.slane %v1023_v1, 2  ;;  %s1027_s14 = smov 80  }
  0x18   : > { %808 = vmatprep.subr.bf16.mxu0 %v1023_v1  ;;  %v949_v6 = vld [vmem:[%s223_s17] sm:$0xff]   ;;  %v950_v7 = vld [vmem:[%s223_s17 + $0x8] sm:$0xff]   ;;  %v951_v8 = vld [vmem:[%s223_s17 + $0x10] sm:$0xff]   ;;  %s1028_s17 = smov 10  }
  0x19   : > { %827 = vmatpush3.bf16.msra.mxu1 %v954_v62 }
  0x1a   : > { %828 = vmatprep.subr.bf16.mxu1 %v1023_v1 }
  0x1b   : > { %809 = vmatpush3.bf16.msra.mxu0 %v295_v5 }
  0x1e   : > { %811 = vmatmul.mubr.msk.bf16.vlgmr.msra.gmra.mrb[0].mxu0 %vm283_vm2, %v949_v6  ;;  %v461_v6 = vrot.slane %v1023_v1, 3 }
  0x1f   : > { %814 = vmatprep.mubr.msk.bf16.mxu0 %vm1024_vm0, %v1023_v1 }
  0x26   : > { %815 = vmatmul.mubr.msk.bf16.gmra.mrb[4].mxu0 %vm283_vm2, %v950_v7  ;;  %v955_v7 = vld [vmem:[%s1292_s3 + $0x18] sm:$0xff]  }
  0x27   : > { %818 = vmatprep.mubr.msk.bf16.mxu0 %vm1024_vm0, %v1023_v1  ;;  %829 = vmatpush3.bf16.msra.mxu1 %v955_v7  ;;  %vm556_vm0 = vcmask 654336  }
  0x28   : > { %830 = vmatprep.subr.bf16.mxu1 %v1023_v1 }
  0x2e   : > { %819 = vmatmul.mubr.msk.bf16.gmra.mrb[8].mxu0 %vm283_vm2, %v951_v8  ;;  %vm562_vm2 = vcmask 818176  }
  0xf1   : > { %v331_v10 = vpop.f32.mrb[0].mxu0 }
  0xf2   : > { %v332_v11 = vadd.f32 %v761_v9, %v331_v10  ;;  %v812_v12 = vpop.f32.mrb[1].mxu0 }
  0xf3   : > { %v334_v13 = vpop.f32.mrb[2].mxu0 }
  0xf4   : > { %v335_v14 = vadd.f32 %v761_v9, %v334_v13  ;;  %360 = vrot.lane.b32.xlu0 %v332_v11, %s1025_s26  ;;  %v813_v15 = vpop.f32.mrb[3].mxu0 }
  0xf6   : > { %386 = vrot.lane.b32.xlu1 %v335_v14, %s1026_s30 }
  0xf8   : > { %384 = vrot.lane.b32.xlu0 %v332_v11, %s1026_s30 }
  0xf9   : > { %v339_v16 = vpop.f32.mrb[4].mxu0 }
  0xfa   : > { %v340_v17 = vadd.f32 %v761_v9, %v339_v16  ;;  %v816_v18 = vpop.f32.mrb[5].mxu0 }
  0xfb   : > { %v342_v19 = vpop.f32.mrb[6].mxu0 }
  0xfc   : > { %362 = vrot.lane.b32.xlu0 %v335_v14, %s1025_s26  ;;  %364 = vrot.lane.b32.xlu1 %v340_v17, %s1025_s26  ;;  %v817_v20 = vpop.f32.mrb[7].mxu0  ;;  %v343_v21 = vadd.f32 %v761_v9, %v342_v19 }
 0x100   : > { %388 = vrot.lane.b32.xlu0 %v340_v17, %s1026_s30  ;;  %366 = vrot.lane.b32.xlu1 %v343_v21, %s1025_s26 }
 0x101   : > { %v347_v22 = vpop.f32.mrb[8].mxu0 }
 0x102   : > { %v348_v23 = vadd.f32 %v761_v9, %v347_v22  ;;  %v820_v24 = vpop.f32.mrb[9].mxu0  ;;  %v485_v22 = vrot.slane %v1023_v1, 5 }
 0x103   : > { %v350_v25 = vpop.f32.mrb[10].mxu0 }
 0x104   : > { %390 = vrot.lane.b32.xlu1 %v343_v21, %s1026_s30  ;;  %368 = vrot.lane.b32.xlu0 %v348_v23, %s1025_s26  ;;  %v821_v26 = vpop.f32.mrb[11].mxu0  ;;  %v351_v27 = vadd.f32 %v761_v9, %v350_v25 }
 0x108   : > { %392 = vrot.lane.b32.xlu0 %v348_v23, %s1026_s30  ;;  %370 = vrot.lane.b32.xlu1 %v351_v27, %s1025_s26  ;;  %s786_s26 = sshll.u32 %s1091_s22, 8 }
 0x109   : > { %s1246_s7 = scalar_lea.hbm %s1294_s5, %s786_s26 }
 0x10c   : > { %394 = vrot.lane.b32.xlu1 %v351_v27, %s1026_s30  ;;  %s1030_s30 = smov 30  }
 0x166   : > { %v361_v29 = vpop.permute.xlu0 %360 }
 0x167   : > { %v378_v30 = vmax.f32 %v332_v11, %v361_v29 }
 0x168   : > { %v387_v31 = vpop.permute.xlu1 %386 }
 0x16a   : > { %v385_v32 = vpop.permute.xlu0 %384 }
 0x16b   : > { %v402_v33 = vmax.f32 %v378_v30, %v385_v32  ;;  %v496_v30 = vrot.slane %v1023_v1, 6 }
 0x16d   : > { %409 = vst.msk [vmem:[#allocation2] sm:$0xff] %vm408_vm3, %v402_v33 }
 0x16e   : > { %v363_v34 = vpop.permute.xlu0 %362  ;;  %v365_v35 = vpop.permute.xlu1 %364 }
 0x16f   : > { %v379_v36 = vmax.f32 %v335_v14, %v363_v34  ;;  %v380_v38 = vmax.f32 %v340_v17, %v365_v35  ;;  %v473_v14 = vrot.slane %v1023_v1, 4  ;;  %v508_v34 = vrot.slane %v1023_v1, 7  ;;  %v957_v35 = vld [vmem:[%s1292_s3 + $0x28] sm:$0xff]  }
 0x171   : > { %v403_v37 = vmax.f32 %v379_v36, %v387_v31 }
 0x172   : > { %v389_v39 = vpop.permute.xlu0 %388  ;;  %v367_v40 = vpop.permute.xlu1 %366 }
 0x173   : > { %410 = vst.msk [vmem:[#allocation2 + $0x8] sm:$0xff] %vm408_vm3, %v403_v37  ;;  %v404_v41 = vmax.f32 %v380_v38, %v389_v39  ;;  %v381_v42 = vmax.f32 %v343_v21, %v367_v40 }
 0x175   : > { %411 = vst.msk [vmem:[#allocation2 + $0x10] sm:$0xff] %vm408_vm3, %v404_v41 }
 0x176   : > { %v391_v43 = vpop.permute.xlu1 %390  ;;  %v369_v44 = vpop.permute.xlu0 %368 }
 0x177   : > { %v405_v45 = vmax.f32 %v381_v42, %v391_v43  ;;  %v382_v46 = vmax.f32 %v348_v23, %v369_v44  ;;  %v956_v23 = vld [vmem:[%s1292_s3 + $0x20] sm:$0xff]   ;;  %v958_v44 = vld [vmem:[%s1292_s3 + $0x30] sm:$0x7f]  }
 0x178   : > { %831 = vmatpush3.bf16.msra.mxu1 %v956_v23 }
 0x179   : > { %412 = vst.msk [vmem:[#allocation2 + $0x18] sm:$0xff] %vm408_vm3, %v405_v45  ;;  %832 = vmatprep.subr.bf16.mxu1 %v1023_v1 }
 0x17a   : > { %v393_v47 = vpop.permute.xlu0 %392  ;;  %v371_v48 = vpop.permute.xlu1 %370 }
 0x17b   : > { %v406_v49 = vmax.f32 %v382_v46, %v393_v47  ;;  %v383_v50 = vmax.f32 %v351_v27, %v371_v48  ;;  %v633_v48 = vsel %vm433_vm4, %v958_v44, 0 }
 0x17c   : > { %v415_v53 = vld [vmem:[#allocation2] ss:$3 sm:$0xff]  ;;  %v419_v54 = vld [vmem:[#allocation2 + $0x1] ss:$3 sm:$0xff]  ;;  %v425_v57 = vld [vmem:[#allocation2 + $0x2] ss:$3 sm:$0xff]  ;;  %833 = vmatpush3.bf16.msra.mxu1 %v957_v35 }
 0x17d   : > { %413 = vst.msk [vmem:[#allocation2 + $0x20] sm:$0xff] %vm408_vm3, %v406_v49  ;;  %v422_v56 = vmax.f32 %v415_v53, %v419_v54  ;;  %834 = vmatprep.subr.bf16.mxu1 %v1023_v1 }
 0x17e   : > { %v395_v51 = vpop.permute.xlu1 %394 }
 0x17f   : > { %v407_v52 = vmax.f32 %v383_v50, %v395_v51  ;;  %v1165_v58 = vmax.f32 %v422_v56, %v425_v57 }
 0x180   : > { %835 = vmatpush3.bf16.msra.mxu1 %v633_v48 }
 0x181   : > { %414 = vst.msk [vmem:[#allocation2 + $0x28] sm:$0xff] %vm408_vm3, %v407_v52  ;;  %v434_v4 = vrot.slane %v1165_v58, 1  ;;  %v446_v5 = vrot.slane %v1165_v58, 2  ;;  %v458_v12 = vrot.slane %v1165_v58, 3  ;;  %v470_v21 = vrot.slane %v1165_v58, 4 }
 0x182   : > { %v482_v31 = vrot.slane %v1165_v58, 5  ;;  %v493_v33 = vrot.slane %v1165_v58, 6  ;;  %v505_v42 = vrot.slane %v1165_v58, 7 }
 0x188   : > { %v417_v59 = vld [vmem:[#allocation2 + $0x18] ss:$3 sm:$0xff]  ;;  %v421_v60 = vld [vmem:[#allocation2 + $0x19] ss:$3 sm:$0xff]  ;;  %v427_v63 = vld [vmem:[#allocation2 + $0x1a] ss:$3 sm:$0xff] }
 0x189   : > { %v423_v61 = vmax.f32 %v417_v59, %v421_v60 }
 0x18b   : > { %v1173_v2 = vmax.f32 %v423_v61, %v427_v63 }
 0x18d   : > { %v895_v8 = vpack.i.bf16 %v1023_v1, %v1173_v2  ;;  %v435_v9 = vrot.slane %v1173_v2, 1  ;;  %v447_v10 = vrot.slane %v1173_v2, 2  ;;  %v459_v11 = vrot.slane %v1173_v2, 3 }
 0x18e   : > { %v471_v13 = vrot.slane %v1173_v2, 4  ;;  %v483_v26 = vrot.slane %v1173_v2, 5  ;;  %v494_v29 = vrot.slane %v1173_v2, 6  ;;  %v506_v39 = vrot.slane %v1173_v2, 7 }
 0x18f   : > { %896 = vrot.lane.b32.xlu1 %v895_v8, %s1027_s14  ;;  %v436_v15 = vsel %vm433_vm4, %v434_v4, %v435_v9  ;;  %v438_v16 = vsel %vm433_vm4, %v435_v9, %v1171_v0  ;;  %v448_v17 = vsel %vm445_vm5, %v446_v5, %v447_v10  ;;  %v450_v18 = vsel %vm445_vm5, %v447_v10, %v1176_v3  ;;  %s216_s14 = sand.u32 1, %s1013_s19  }
 0x190   : > { %v900_v19 = vpack.i.bf16 %v438_v16, %v436_v15  ;;  %v905_v20 = vpack.i.bf16 %v450_v18, %v448_v17  ;;  %v460_v24 = vsel %vm457_vm6, %v458_v12, %v459_v11  ;;  %v462_v25 = vsel %vm457_vm6, %v459_v11, %v461_v6  ;;  %s759_s15 = sshll.u32 %s216_s14, 4  ;;  %s1248_s8 = scalar_lea.sflag [#allocation4], %s216_s14 }
 0x191   : > { %v472_v27 = vsel %vm469_vm7, %v470_v21, %v471_v13  ;;  %v474_v28 = vsel %vm469_vm7, %v471_v13, %v473_v14  ;;  %v910_v32 = vpack.i.bf16 %v462_v25, %v460_v24  ;;  %v484_v37 = vsel %vm481_vm8, %v482_v31, %v483_v26 }
 0x192   : > { %901 = vrot.lane.b32.xlu0 %v900_v19, %s1028_s17  ;;  %v915_v36 = vpack.i.bf16 %v474_v28, %v472_v27  ;;  %v486_v38 = vsel %vm481_vm8, %v483_v26, %v485_v22  ;;  %v495_v40 = vsel %vm293_vm1, %v493_v33, %v494_v29  ;;  %v497_v41 = vsel %vm293_vm1, %v494_v29, %v496_v30 }
 0x193   : > { %906 = vrot.lane.b32.xlu1 %v905_v20, %s1029_s23  ;;  %v920_v43 = vpack.i.bf16 %v486_v38, %v484_v37  ;;  %v925_v45 = vpack.i.bf16 %v497_v41, %v495_v40  ;;  %v507_v46 = vsel %vm504_vm9, %v505_v42, %v506_v39  ;;  %v509_v47 = vsel %vm504_vm9, %v506_v39, %v508_v34  ;;  %v772_v39 = vld [vmem:[%s1293_s4] ss:$0 sm:$0xff]  ;;  %s218_s23 = scalar_lea.vmem [#allocation3], %s759_s15 }
 0x194   : > { %v930_v49 = vpack.i.bf16 %v509_v47, %v507_v46  ;;  %v940_v50 = vpack.i.bf16 %v1176_v3, %v450_v18  ;;  %v935_v51 = vpack.i.bf16 %v1171_v0, %v438_v16  ;;  %vm559_vm1 = vcmask 736256   ;;  %s693_s25 = sshll.u32 %s218_s23, 4  ;;  %s1241_s25 = int_to_ptr.vmem [resolvable:$true] %s693_s25 }
 0x195   : > { %vm676_vm4 = vcmask 523264   ;;  %s959_s22 = scalar_lea.vmem %s1241_s25, 256 }
 0x196   : > { %911 = vrot.lane.b32.xlu0 %v910_v32, %s1030_s30  ;;  %p960_p11 = scmp.ne.s32.totalorder %s1241_s25, %s959_s22 }
 0x197   : > { %916 = vrot.lane.b32.xlu1 %v915_v36, %s1031_s6 }
 0x198   : > { %p961_p12 = pnand %p960_p11, %p1108_p5 }
 0x19a   : > { %921 = vrot.lane.b32.xlu0 %v920_v43, %s1032_s9  ;;  %p962_p13 = pneg %p961_p12  ;;  %s1037_s9 = smov [#allocation3]  }
 0x19b   : > { %926 = vrot.lane.b32.xlu1 %v925_v45, %s1033_s10  ;;  %s963_s10 = sshll.u32 %s1037_s9, 4  ;;  %s964_s10 = int_to_ptr.vmem [resolvable:$false] %s963_s10 }
 0x19c   : > { %p966_p0 = scmp.lt.s32.totalorder %s1241_s25, %s964_s10 }
 0x19e   : > { %931 = vrot.lane.b32.xlu0 %v930_v49, %s1034_s11  ;;  %s965_s11 = scalar_lea.vmem %s964_s10, 512 }
 0x19f   : > { %941 = vrot.lane.b32.xlu1 %v940_v50, %s1035_s12  ;;  %p967_p1 = scmp.lt.s32.totalorder %s965_s11, %s959_s22 }
 0x1a1   : > { %p968_p2 = por %p967_p1, %p966_p0 }
 0x1a2   : > { %936 = vrot.lane.b32.xlu0 %v935_v51, %s1036_s13 }
 0x1a3   : > { %p969_p3 = pnand %p968_p2, %p962_p13 }
 0x201   : > { %v897_v52 = vpop.permute.xlu1 %896 }
 0x202   : > { %v899_v25 = vunpack.i.h.bf16 %v897_v52  ;;  %v898_v26 = vunpack.i.l.bf16 %v897_v52 }
 0x204   : > { %v902_v1 = vpop.permute.xlu0 %901 }
 0x205   : > { %v904_v53 = vunpack.i.h.bf16 %v902_v1  ;;  %v903_v54 = vunpack.i.l.bf16 %v902_v1  ;;  %v907_v55 = vpop.permute.xlu1 %906 }
 0x206   : > { %v909_v56 = vunpack.i.h.bf16 %v907_v55  ;;  %v908_v57 = vunpack.i.l.bf16 %v907_v55 }
 0x207   : > { %v537_v59 = vsel %vm408_vm3, %v1173_v2, %v904_v53  ;;  %v536_v60 = vsel %vm408_vm3, %v1165_v58, %v903_v54  ;;  %vm628_vm3 = vcmask 900096  }
 0x208   : > { %v912_v61 = vpop.permute.xlu0 %911  ;;  %v539_v3 = vsel %vm538_vm10, %v536_v60, %v908_v57  ;;  %v540_v4 = vsel %vm538_vm10, %v537_v59, %v909_v56 }
 0x209   : > { %v914_v62 = vunpack.i.h.bf16 %v912_v61  ;;  %v913_v63 = vunpack.i.l.bf16 %v912_v61  ;;  %v917_v0 = vpop.permute.xlu1 %916 }
 0x20a   : > { %v919_v5 = vunpack.i.h.bf16 %v917_v0  ;;  %v918_v6 = vunpack.i.l.bf16 %v917_v0 }
 0x20b   : > { %v542_v7 = vsel %vm541_vm11, %v539_v3, %v913_v63  ;;  %v543_v8 = vsel %vm541_vm11, %v540_v4, %v914_v62 }
 0x20c   : > { %v922_v9 = vpop.permute.xlu0 %921  ;;  %v545_v12 = vsel %vm544_vm12, %v542_v7, %v918_v6  ;;  %v546_v58 = vsel %vm544_vm12, %v543_v8, %v919_v5 }
 0x20d   : > { %v924_v10 = vunpack.i.h.bf16 %v922_v9  ;;  %v923_v2 = vunpack.i.l.bf16 %v922_v9  ;;  %v927_v11 = vpop.permute.xlu1 %926 }
 0x20e   : > { %v929_v13 = vunpack.i.h.bf16 %v927_v11  ;;  %v928_v14 = vunpack.i.l.bf16 %v927_v11 }
 0x20f   : > { %v548_v15 = vsel %vm547_vm13, %v545_v12, %v923_v2  ;;  %v549_v16 = vsel %vm547_vm13, %v546_v58, %v924_v10 }
 0x210   : > { %v932_v17 = vpop.permute.xlu0 %931  ;;  %v551_v20 = vsel %vm550_vm14, %v548_v15, %v928_v14  ;;  %v552_v21 = vsel %vm550_vm14, %v549_v16, %v929_v13 }
 0x211   : > { %v934_v18 = vunpack.i.h.bf16 %v932_v17  ;;  %v933_v19 = vunpack.i.l.bf16 %v932_v17  ;;  %v942_v24 = vpop.permute.xlu1 %941 }
 0x212   : > { %v944_v30 = vunpack.i.h.bf16 %v942_v24  ;;  %v943_v31 = vunpack.i.l.bf16 %v942_v24 }
 0x213   : > { %v554_v22 = vsel %vm553_vm15, %v551_v20, %v933_v19  ;;  %v555_v23 = vsel %vm553_vm15, %v552_v21, %v934_v18 }
 0x214   : > { %v937_v27 = vpop.permute.xlu0 %936  ;;  %v557_v32 = vsel %vm556_vm0, %v554_v22, %v898_v26  ;;  %v558_v33 = vsel %vm556_vm0, %v555_v23, %v899_v25 }
 0x215   : > { %v939_v28 = vunpack.i.h.bf16 %v937_v27  ;;  %v938_v29 = vunpack.i.l.bf16 %v937_v27 }
 0x217   : > { %v560_v34 = vsel %vm559_vm1, %v557_v32, %v938_v29  ;;  %v561_v35 = vsel %vm559_vm1, %v558_v33, %v939_v28 }
 0x218   : > { %v563_v36 = vsel %vm562_vm2, %v560_v34, %v943_v31  ;;  %v564_v37 = vsel %vm562_vm2, %v561_v35, %v944_v30 }
 0x219   : > { %v565_v38 = vpack.c.bf16 %v564_v37, %v563_v36 }
 0x21b   : > { %837 = vmatmul.mubr.msk.bf16.vlgmr.msra.gmra.mrb[0].mxu1 %vm628_vm3, %v565_v38 }
 0x2ee   : > { %v669_v40 = vpop.f32.mrb[0].mxu1 }
 0x2ef   : > { %v670_v41 = vadd.f32 %v772_v39, %v669_v40  ;;  %v838_v42 = vpop.f32.mrb[1].mxu1 }
 0x2f0   : > { %v672_v43 = vpop.f32.mrb[2].mxu1 }
 0x2f1   : > { %677 = vst.msk [vmem:[%s218_s23] sm:$0xff] %vm676_vm4, %v670_v41  ;;  %v673_v44 = vadd.f32 %v772_v39, %v672_v43  ;;  %v839_v45 = vpop.f32.mrb[3].mxu1 }
 0x2f3   : > { %678 = vst.msk [vmem:[%s218_s23 + $0x8] sm:$0xff] %vm676_vm4, %v673_v44 }
 0x2f4   : > { %972 = shalt.err (!%p969_p3)
}
 0x2f5   : > { %s973_s12 = scalar_lea.hbm %s1246_s7, 256  ;;  %s977_s15 = scalar_lea.hbm %s1294_s5, 512 }
 0x2f6   : > { %p974_p4 = scmp.ne.s32.totalorder %s1246_s7, %s973_s12  ;;  %p978_p9 = scmp.lt.u32.totalorder %s1246_s7, %s1294_s5 }
 0x2f7   : > { %p979_p10 = scmp.lt.u32.totalorder %s977_s15, %s973_s12  ;;  %p981_p12 = scmp.lt.u32.totalorder %s973_s12, %s1246_s7 }
 0x2f8   : > { %p975_p7 = pnand %p974_p4, %p1108_p5 }
 0x2f9   : > { %p980_p11 = por %p979_p10, %p978_p9 }
 0x2fa   : > { %p976_p8 = pneg %p975_p7 }
 0x2fb   : > { %p982_p13 = por %p981_p12, %p980_p11 }
 0x2fd   : > { %p983_p0 = pnand %p982_p13, %p976_p8 }
 0x2ff   : > { %986 = shalt.err (!%p983_p0)
}
 0x300   : > { %s1038_s23 = smov 128   ;;  %s1039_s26 = smov 8  }
 0x301   : > { %840 = dma.vmem_to_hbm [thread:$0]  (%p1108_p5), %s1241_s25, 256, %s1246_s7, %s1248_s8, %s1038_s23, %s1038_s23, %s1039_s26  }
 0x302 PF: > { %p846_p1 = scmp.ge.s32.totalorder %s1021_s21, 2  ;;  %s708_s30 = sand.u32 1, %s1009_s18  }
 0x303   : > { %s709_s6 = scalar_lea.sflag [#allocation4], %s708_s30 }
 0x304   : > { %p843_p2 = pnand %p846_p1, %p1112_p6 }
 0x306   : > { %1004 = dma.done.wait (!%p843_p2), %s709_s6, 256  }
 0x307   : > { %1006 = vsyncadd (!%p843_p2), %s709_s6, 4294967040  ;;  %p15_p3 = scmp.ge.s32.totalorder %s1095_s24, 4   ;;  %s1297_s18 = smov %s1013_s19 }
 0x308   : > { %s1298_s19 = smov %s1017_s20  ;;  %s1299_s20 = smov %s1106_s27 }
 0x309   : > { %s1300_s21 = smov %s1095_s24  ;;  %17 = sbr.rel (!%p15_p3) target bundleno = 3 (0x3), region = 80 }
 0x310   :  { %714 = vsyncpa [#allocation4], 1 }
 0x311   :  { %716 = vsyncpa [#allocation4 + $0x1], 1 }

</bundles_post_ra>
